<compile_context>
chip_gen: v5e
topology: v5e:2x2
jax: 0.10.0
libtpu: 0.0.40
codegen_flags: <defaults>
</compile_context>

<pallas_src>
import jax
import jax.numpy as jnp
from jax.experimental import pallas as pl
from jax.experimental.pallas import tpu as pltpu


def _round_up(n, m):
    return ((n + m - 1) // m) * m


def dqn_kernel(x_ref, w1_ref, b1_ref, w2_ref, b2_ref,
               w3_ref, b3_ref, w4_ref, b4_ref, o_ref):
    # x arrives in f32; the bf16 cast is a VPU op hidden under MXU slack
    # (cheaper than a separate XLA cast pass over x in the wrapper).
    h = x_ref[...].astype(jnp.bfloat16)
    # bf16 MXU operands, f32 accumulation; bias add / ReLU in f32 (v5e VPU).
    h = jnp.dot(h, w1_ref[...], preferred_element_type=jnp.float32) + b1_ref[...]
    h = jnp.maximum(h, 0.0).astype(jnp.bfloat16)
    h = jnp.dot(h, w2_ref[...], preferred_element_type=jnp.float32) + b2_ref[...]
    h = jnp.maximum(h, 0.0).astype(jnp.bfloat16)
    h = jnp.dot(h, w3_ref[...], preferred_element_type=jnp.float32) + b3_ref[...]
    h = jnp.maximum(h, 0.0).astype(jnp.bfloat16)
    # Final layer writes the unpadded (TB, A) block directly; the masked
    # narrow store is cheap relative to the per-block MXU work.
    o_ref[...] = (jnp.dot(h, w4_ref[...], preferred_element_type=jnp.float32)
                  + b4_ref[...])


def dqn_forward(x, kparams, *, tb=512):
    """x: (B, state_size) float32.  kparams: from to_kernel_params()."""
    B, S = x.shape
    A = kparams["w4"].shape[1]

    # Pick the block count first so last-block padding is minimal, then the
    # tile.  Mid/large batches get >=2 grid steps so both v7x TensorCores work.
    n_blocks = pl.cdiv(B, tb)
    if n_blocks == 1 and B >= 64:
        n_blocks = 2
    TB = _round_up(pl.cdiv(B, n_blocks), 8)
    B_pad = _round_up(B, TB)

    x_in = x
    if B_pad != B:
        x_in = jnp.pad(x, ((0, B_pad - B), (0, 0)))

    grid = (B_pad // TB,)

    batch_map = lambda i: (i, 0)
    const_map = lambda i: (0, 0)

    # NOTE: constant-index weight/bias blocks could use pipeline_mode=
    # pl.Buffered(1) to drop the second buffer, but at ~164 KiB total the
    # saving is negligible; kept default for compile robustness.
    in_specs = [
        pl.BlockSpec((TB, S), batch_map),
        pl.BlockSpec(kparams["w1"].shape, const_map),
        pl.BlockSpec(kparams["b1"].shape, const_map),
        pl.BlockSpec(kparams["w2"].shape, const_map),
        pl.BlockSpec(kparams["b2"].shape, const_map),
        pl.BlockSpec(kparams["w3"].shape, const_map),
        pl.BlockSpec(kparams["b3"].shape, const_map),
        pl.BlockSpec(kparams["w4"].shape, const_map),
        pl.BlockSpec(kparams["b4"].shape, const_map),
    ]
    out_specs = pl.BlockSpec((TB, A), batch_map)

    # Advisory scheduling hint for XLA.
    flops = 2 * B_pad * (S * 128 + 128 * 256 + 256 * 128 + 128 * A)
    bytes_accessed = (
        B_pad * S * x_in.dtype.itemsize
        + sum(kparams[f"w{i}"].size for i in range(1, 5)) * 2
        + sum(kparams[f"b{i}"].size for i in range(1, 5)) * 4
        + B_pad * A * 4)
    cost = pl.CostEstimate(flops=flops, transcendentals=0,
                           bytes_accessed=bytes_accessed)

    out = pl.pallas_call(
        dqn_kernel,
        out_shape=jax.ShapeDtypeStruct((B_pad, A), jnp.float32),
        grid=grid,
        in_specs=in_specs,
        out_specs=out_specs,
        compiler_params=pltpu.CompilerParams(
            dimension_semantics=("parallel",)),
        cost_estimate=cost,
    )(x_in,
      kparams["w1"], kparams["b1"],
      kparams["w2"], kparams["b2"],
      kparams["w3"], kparams["b3"],
      kparams["w4"], kparams["b4"])

    return out if B_pad == B else out[:B]


def init_params(key, state_size, action_size):
    """f32 params mimicking PyTorch nn.Linear default init (U[-1/sqrt(fan_in), +])."""
    dims = [(state_size, 128), (128, 256), (256, 128), (128, action_size)]
    params = {}
    for i, (fan_in, fan_out) in enumerate(dims, start=1):
        key, kw, kb = jax.random.split(key, 3)
        bound = 1.0 / jnp.sqrt(float(fan_in))
        # stored as (in, out) so the kernel can do x @ W directly
        params[f"w{i}"] = jax.random.uniform(
            kw, (fan_in, fan_out), jnp.float32, minval=-bound, maxval=bound)
        params[f"b{i}"] = jax.random.uniform(
            kb, (1, fan_out), jnp.float32, minval=-bound, maxval=bound)
    return params


def to_kernel_params(params):
    """bf16 weights (MXU operands), f32 biases; no output padding needed."""
    kp = {}
    for i in range(1, 5):
        kp[f"w{i}"] = params[f"w{i}"].astype(jnp.bfloat16)
        kp[f"b{i}"] = params[f"b{i}"].astype(jnp.float32)
    return kp


def dqn_reference(x, kparams):
    """f32 reference using the same bf16-quantized weights/input the kernel sees."""
    w = {i: kparams[f"w{i}"].astype(jnp.float32) for i in range(1, 5)}
    b = {i: kparams[f"b{i}"] for i in range(1, 5)}
    h = x.astype(jnp.bfloat16).astype(jnp.float32)
    h = jnp.maximum(h @ w[1] + b[1], 0.0)
    h = jnp.maximum(h @ w[2] + b[2], 0.0)
    h = jnp.maximum(h @ w[3] + b[3], 0.0)
    return h @ w[4] + b[4]


if __name__ == "__main__":
    state_size = 16
    action_size = 4
    batch = 8

    key = jax.random.PRNGKey(0)
    key, kx = jax.random.split(key)
    x = jax.random.normal(kx, (batch, state_size), jnp.float32)

    params = init_params(key, state_size, action_size)
    kparams = to_kernel_params(params)

    out = dqn_forward(x, kparams)
    out = jax.block_until_ready(out)

    ref = dqn_reference(x, kparams)
    assert out.shape == (batch, action_size), out.shape
    # bf16 matmul operands with f32 accumulation -> relaxed tolerance
    assert jnp.allclose(out, ref, atol=5e-2, rtol=5e-2), (
        float(jnp.max(jnp.abs(out - ref))))

    print("KERNEL_OK")
</pallas_src>

<mosaic_0001>
module attributes {stable_mosaic.version = 11 : i64} {
  func.func @dqn_kernel(%arg0: i32, %arg1: memref<8x16xf32, #tpu.memory_space<vmem>>, %arg2: memref<16x128xbf16, #tpu.memory_space<vmem>>, %arg3: memref<1x128xf32, #tpu.memory_space<vmem>>, %arg4: memref<128x256xbf16, #tpu.memory_space<vmem>>, %arg5: memref<1x256xf32, #tpu.memory_space<vmem>>, %arg6: memref<256x128xbf16, #tpu.memory_space<vmem>>, %arg7: memref<1x128xf32, #tpu.memory_space<vmem>>, %arg8: memref<128x4xbf16, #tpu.memory_space<vmem>>, %arg9: memref<1x4xf32, #tpu.memory_space<vmem>>, %arg10: memref<8x4xf32, #tpu.memory_space<vmem>>) attributes {dimension_semantics = [#tpu.dimension_semantics<parallel>], iteration_bounds = array<i64: 1>, scalar_prefetch = 0 : i64, scratch_operands = 0 : i64, tpu.core_type = #tpu.core_type<tc>, window_params = [{transform_indices = @transform_0, window_bounds = array<i64: 8, 16>}, {pipeline_mode = #tpu.pipeline_mode<synchronous>, transform_indices = @transform_1, window_bounds = array<i64: 16, 128>}, {pipeline_mode = #tpu.pipeline_mode<synchronous>, transform_indices = @transform_2, window_bounds = array<i64: 1, 128>}, {pipeline_mode = #tpu.pipeline_mode<synchronous>, transform_indices = @transform_3, window_bounds = array<i64: 128, 256>}, {pipeline_mode = #tpu.pipeline_mode<synchronous>, transform_indices = @transform_4, window_bounds = array<i64: 1, 256>}, {pipeline_mode = #tpu.pipeline_mode<synchronous>, transform_indices = @transform_5, window_bounds = array<i64: 256, 128>}, {pipeline_mode = #tpu.pipeline_mode<synchronous>, transform_indices = @transform_6, window_bounds = array<i64: 1, 128>}, {pipeline_mode = #tpu.pipeline_mode<synchronous>, transform_indices = @transform_7, window_bounds = array<i64: 128, 4>}, {pipeline_mode = #tpu.pipeline_mode<synchronous>, transform_indices = @transform_8, window_bounds = array<i64: 1, 4>}, {transform_indices = @transform_9, window_bounds = array<i64: 8, 4>}]} {
    %c0 = arith.constant 0 : index
    %c0_0 = arith.constant 0 : index
    %0 = vector.load %arg1[%c0, %c0_0] : memref<8x16xf32, #tpu.memory_space<vmem>>, vector<8x16xf32>
    %1 = arith.truncf %0 : vector<8x16xf32> to vector<8x16xbf16>
    %c0_1 = arith.constant 0 : index
    %c0_2 = arith.constant 0 : index
    %2 = vector.load %arg2[%c0_1, %c0_2] : memref<16x128xbf16, #tpu.memory_space<vmem>>, vector<16x128xbf16>
    %cst = arith.constant dense<0.000000e+00> : vector<8x128xf32>
    %3 = tpu.matmul %1, %2, %cst {dimension_numbers = #tpu.dot_dimension_numbers<[1], [0], [0], [1], [0, 0, 1, 1], [], []>} : vector<8x16xbf16>, vector<16x128xbf16>, vector<8x128xf32> -> vector<8x128xf32>
    %c0_3 = arith.constant 0 : index
    %c0_4 = arith.constant 0 : index
    %4 = vector.load %arg3[%c0_3, %c0_4] : memref<1x128xf32, #tpu.memory_space<vmem>>, vector<1x128xf32>
    %5 = vector.broadcast %4 : vector<1x128xf32> to vector<8x128xf32>
    %6 = arith.addf %3, %5 : vector<8x128xf32>
    %cst_5 = arith.constant 0.000000e+00 : f32
    %7 = vector.broadcast %cst_5 : f32 to vector<8x128xf32>
    %8 = arith.maximumf %6, %7 : vector<8x128xf32>
    %9 = arith.truncf %8 : vector<8x128xf32> to vector<8x128xbf16>
    %c0_6 = arith.constant 0 : index
    %c0_7 = arith.constant 0 : index
    %10 = vector.load %arg4[%c0_6, %c0_7] : memref<128x256xbf16, #tpu.memory_space<vmem>>, vector<128x256xbf16>
    %cst_8 = arith.constant dense<0.000000e+00> : vector<8x256xf32>
    %11 = tpu.matmul %9, %10, %cst_8 {dimension_numbers = #tpu.dot_dimension_numbers<[1], [0], [0], [1], [0, 0, 1, 1], [], []>} : vector<8x128xbf16>, vector<128x256xbf16>, vector<8x256xf32> -> vector<8x256xf32>
    %c0_9 = arith.constant 0 : index
    %c0_10 = arith.constant 0 : index
    %12 = vector.load %arg5[%c0_9, %c0_10] : memref<1x256xf32, #tpu.memory_space<vmem>>, vector<1x256xf32>
    %13 = vector.broadcast %12 : vector<1x256xf32> to vector<8x256xf32>
    %14 = arith.addf %11, %13 : vector<8x256xf32>
    %cst_11 = arith.constant 0.000000e+00 : f32
    %15 = vector.broadcast %cst_11 : f32 to vector<8x256xf32>
    %16 = arith.maximumf %14, %15 : vector<8x256xf32>
    %17 = arith.truncf %16 : vector<8x256xf32> to vector<8x256xbf16>
    %c0_12 = arith.constant 0 : index
    %c0_13 = arith.constant 0 : index
    %18 = vector.load %arg6[%c0_12, %c0_13] : memref<256x128xbf16, #tpu.memory_space<vmem>>, vector<256x128xbf16>
    %cst_14 = arith.constant dense<0.000000e+00> : vector<8x128xf32>
    %19 = tpu.matmul %17, %18, %cst_14 {dimension_numbers = #tpu.dot_dimension_numbers<[1], [0], [0], [1], [0, 0, 1, 1], [], []>} : vector<8x256xbf16>, vector<256x128xbf16>, vector<8x128xf32> -> vector<8x128xf32>
    %c0_15 = arith.constant 0 : index
    %c0_16 = arith.constant 0 : index
    %20 = vector.load %arg7[%c0_15, %c0_16] : memref<1x128xf32, #tpu.memory_space<vmem>>, vector<1x128xf32>
    %21 = vector.broadcast %20 : vector<1x128xf32> to vector<8x128xf32>
    %22 = arith.addf %19, %21 : vector<8x128xf32>
    %cst_17 = arith.constant 0.000000e+00 : f32
    %23 = vector.broadcast %cst_17 : f32 to vector<8x128xf32>
    %24 = arith.maximumf %22, %23 : vector<8x128xf32>
    %25 = arith.truncf %24 : vector<8x128xf32> to vector<8x128xbf16>
    %c0_18 = arith.constant 0 : index
    %c0_19 = arith.constant 0 : index
    %26 = vector.load %arg8[%c0_18, %c0_19] : memref<128x4xbf16, #tpu.memory_space<vmem>>, vector<128x4xbf16>
    %cst_20 = arith.constant dense<0.000000e+00> : vector<8x4xf32>
    %27 = tpu.matmul %25, %26, %cst_20 {dimension_numbers = #tpu.dot_dimension_numbers<[1], [0], [0], [1], [0, 0, 1, 1], [], []>} : vector<8x128xbf16>, vector<128x4xbf16>, vector<8x4xf32> -> vector<8x4xf32>
    %c0_21 = arith.constant 0 : index
    %c0_22 = arith.constant 0 : index
    %28 = vector.load %arg9[%c0_21, %c0_22] : memref<1x4xf32, #tpu.memory_space<vmem>>, vector<1x4xf32>
    %29 = vector.broadcast %28 : vector<1x4xf32> to vector<8x4xf32>
    %30 = arith.addf %27, %29 : vector<8x4xf32>
    %c0_23 = arith.constant 0 : index
    %c0_24 = arith.constant 0 : index
    %31 = vector.load %arg10[%c0_23, %c0_24] : memref<8x4xf32, #tpu.memory_space<vmem>>, vector<8x4xf32>
    tpu.vector_store %arg10[%c0_23, %c0_24], %30 {strides = array<i32>} : memref<8x4xf32, #tpu.memory_space<vmem>>, vector<8x4xf32>,
    return
  }
  func.func @transform_0(%arg0: i32) -> (i32, i32) {
    %c0_i32 = arith.constant 0 : i32
    %c0_i32_0 = arith.constant 0 : i32
    return %arg0, %c0_i32 : i32, i32
  }
  func.func @transform_1(%arg0: i32) -> (i32, i32) {
    %c0_i32 = arith.constant 0 : i32
    %c0_i32_0 = arith.constant 0 : i32
    %c0_i32_1 = arith.constant 0 : i32
    return %c0_i32, %c0_i32_0 : i32, i32
  }
  func.func @transform_2(%arg0: i32) -> (i32, i32) {
    %c0_i32 = arith.constant 0 : i32
    %c0_i32_0 = arith.constant 0 : i32
    %c0_i32_1 = arith.constant 0 : i32
    return %c0_i32, %c0_i32_0 : i32, i32
  }
  func.func @transform_3(%arg0: i32) -> (i32, i32) {
    %c0_i32 = arith.constant 0 : i32
    %c0_i32_0 = arith.constant 0 : i32
    %c0_i32_1 = arith.constant 0 : i32
    return %c0_i32, %c0_i32_0 : i32, i32
  }
  func.func @transform_4(%arg0: i32) -> (i32, i32) {
    %c0_i32 = arith.constant 0 : i32
    %c0_i32_0 = arith.constant 0 : i32
    %c0_i32_1 = arith.constant 0 : i32
    return %c0_i32, %c0_i32_0 : i32, i32
  }
  func.func @transform_5(%arg0: i32) -> (i32, i32) {
    %c0_i32 = arith.constant 0 : i32
    %c0_i32_0 = arith.constant 0 : i32
    %c0_i32_1 = arith.constant 0 : i32
    return %c0_i32, %c0_i32_0 : i32, i32
  }
  func.func @transform_6(%arg0: i32) -> (i32, i32) {
    %c0_i32 = arith.constant 0 : i32
    %c0_i32_0 = arith.constant 0 : i32
    %c0_i32_1 = arith.constant 0 : i32
    return %c0_i32, %c0_i32_0 : i32, i32
  }
  func.func @transform_7(%arg0: i32) -> (i32, i32) {
    %c0_i32 = arith.constant 0 : i32
    %c0_i32_0 = arith.constant 0 : i32
    %c0_i32_1 = arith.constant 0 : i32
    return %c0_i32, %c0_i32_0 : i32, i32
  }
  func.func @transform_8(%arg0: i32) -> (i32, i32) {
    %c0_i32 = arith.constant 0 : i32
    %c0_i32_0 = arith.constant 0 : i32
    %c0_i32_1 = arith.constant 0 : i32
    return %c0_i32, %c0_i32_0 : i32, i32
  }
  func.func @transform_9(%arg0: i32) -> (i32, i32) {
    %c0_i32 = arith.constant 0 : i32
    %c0_i32_0 = arith.constant 0 : i32
    return %arg0, %c0_i32 : i32, i32
  }
}

</mosaic_0001>

<bundles_post_ra>
// kernel: tpu_custom_call.1
= control target key start
LH: loop header
LB: loop body
LE: loop exit
PB: predicated region body
PF: predicated region fallthrough
CT: control target
= control target key end

     0   :  { %14 = vsyncpa [#allocation3], 0  ;;  %s854_s0 = inlined_call_operand.vmem [shape: f32[8,16], index: 0, kind: input, shape index: {}]   ;;  %s855_s1 = inlined_call_operand.vmem [shape: bf16[16,128], index: 1, kind: input, shape index: {}]   ;;  %s856_s2 = inlined_call_operand.vmem [shape: f32[1,128], index: 2, kind: input, shape index: {}]   ;;  %s857_s3 = inlined_call_operand.hbm [shape: bf16[128,256], index: 3, kind: input, shape index: {}]   ;;  %s858_s4 = inlined_call_operand.vmem [shape: f32[1,256], index: 4, kind: input, shape index: {}]   ;;  %s859_s5 = inlined_call_operand.hbm [shape: bf16[256,128], index: 5, kind: input, shape index: {}]   ;;  %s860_s6 = inlined_call_operand.vmem [shape: f32[1,128], index: 6, kind: input, shape index: {}]   ;;  %s861_s7 = inlined_call_operand.vmem [shape: bf16[128,4], index: 7, kind: input, shape index: {}]   ;;  %s862_s8 = inlined_call_operand.vmem [shape: f32[1,4], index: 8, kind: input, shape index: {}]   ;;  %s863_s9 = inlined_call_operand.vmem [shape: f32[8,4], index: 9, kind: output, shape index: {}]  }
   0x1   :  { %s26_s11 = sshll.u32 %s857_s3, 4  ;;  %s27_s11 = int_to_ptr.hbm [resolvable:$true] %s26_s11 }
   0x2   :  { %15 = vsyncpa [#allocation5], 0  ;;  %s746_s12 = smov [#allocation2]   ;;  %s41_s16 = sshll.u32 %s859_s5, 4  ;;  %s42_s16 = int_to_ptr.hbm [resolvable:$true] %s41_s16 }
   0x3   :  { %s28_s13 = sshll.u32 %s746_s12, 4  ;;  %s747_s17 = smov 128   ;;  %s29_s13 = int_to_ptr.vmem [resolvable:$true] %s28_s13 }
   0x4   :  { %s748_s18 = smov 8   ;;  %s749_s19 = smov [#allocation4]  }
   0x5   :  { %34 = dma.hbm_to_vmem [thread:$0]  %s27_s11, 2048, %s29_s13, [#allocation3], %s747_s17, %s747_s17, %s748_s18  }
   0x6   :  { %s43_s20 = sshll.u32 %s749_s19, 4  ;;  %s750_s21 = smov 64   ;;  %s44_s20 = int_to_ptr.vmem [resolvable:$true] %s43_s20 }
   0x7   :  { %s751_s22 = smov 4  }
   0x8   :  { %49 = dma.hbm_to_vmem [thread:$0]  %s42_s16, 2048, %s44_s20, [#allocation5], %s750_s21, %s750_s21, %s751_s22  }
   0x9   :  { %742 = dma.done.wait [#allocation3], 2048  }
   0xa   :  { %743 = vsyncadd [#allocation3], 4294965248 }
   0xb   :  { %744 = dma.done.wait [#allocation5], 2048  }
   0xc   :  { %745 = vsyncadd [#allocation5], 4294965248  ;;  %v644_v0 = vld [vmem:[%s855_s1] sm:$0xff]  ;;  %vm79_vm0 = vcmask 130048   ;;  %v542_v2 = vld [vmem:[#allocation2 + $0x70] sm:$0xf] }
   0xd   :  { %v65_v1 = vld [vmem:[%s854_s0] sm:$0xff]  ;;  %v660_v4 = vld [vmem:[#allocation2 + $0x74] sm:$0xf0]  ;;  %v659_v5 = vld [vmem:[#allocation2 + $0x74] sm:$0xf]  ;;  %90 = vmatpush.bf16.msra.mxu0 %v644_v0  ;;  %vm471_vm1 = vcmask 31744  }
   0xe   :  { %v66_v3 = vpack.c.bf16 %v65_v1, %v65_v1  ;;  %v544_v6 = vld [vmem:[#allocation2 + $0x78] sm:$0xf0]  ;;  %v543_v7 = vor.u32 %v660_v4, %v542_v2  ;;  %v534_v9 = vld [vmem:[#allocation2 + $0x60] sm:$0xf]  ;;  %v658_v10 = vld [vmem:[#allocation2 + $0x64] sm:$0xf0] }
   0xf   :  { %v547_v8 = vor.u32 %v659_v5, %v544_v6  ;;  %v657_v11 = vld [vmem:[#allocation2 + $0x64] sm:$0xf]  ;;  %v536_v12 = vld [vmem:[#allocation2 + $0x68] sm:$0xf0]  ;;  %v535_v13 = vor.u32 %v658_v10, %v534_v9  ;;  %v526_v15 = vld [vmem:[#allocation2 + $0x50] sm:$0xf] }
  0x10   :  { %200 = vmatpush.bf16.msra.mxu1 %v543_v7  ;;  %v539_v14 = vor.u32 %v657_v11, %v536_v12  ;;  %483 = vmatmul.msk.bf16.vlgmr.msra.gmra.mxu0 %vm79_vm0, %v66_v3  ;;  %v656_v16 = vld [vmem:[#allocation2 + $0x54] sm:$0xf0]  ;;  %v655_v17 = vld [vmem:[#allocation2 + $0x54] sm:$0xf]  ;;  %v528_v18 = vld [vmem:[#allocation2 + $0x58] sm:$0xf0] }
  0x11   :  { %213 = vmatpush.bf16.msra.mxu2 %v547_v8  ;;  %v518_v19 = vld [vmem:[#allocation2 + $0x40] sm:$0xf]  ;;  %v527_v20 = vor.u32 %v656_v16, %v526_v15  ;;  %v531_v21 = vor.u32 %v655_v17, %v528_v18  ;;  %v654_v22 = vld [vmem:[#allocation2 + $0x44] sm:$0xf0]  ;;  %v653_v23 = vld [vmem:[#allocation2 + $0x44] sm:$0xf] }
  0x12   :  { %v520_v24 = vld [vmem:[#allocation2 + $0x48] sm:$0xf0]  ;;  %v519_v25 = vor.u32 %v654_v22, %v518_v19  ;;  %v510_v27 = vld [vmem:[#allocation2 + $0x30] sm:$0xf]  ;;  %v652_v28 = vld [vmem:[#allocation2 + $0x34] sm:$0xf0] }
  0x13   :  { %v523_v26 = vor.u32 %v653_v23, %v520_v24  ;;  %v651_v29 = vld [vmem:[#allocation2 + $0x34] sm:$0xf]  ;;  %v512_v30 = vld [vmem:[#allocation2 + $0x38] sm:$0xf0]  ;;  %v511_v31 = vor.u32 %v652_v28, %v510_v27  ;;  %v502_v33 = vld [vmem:[#allocation2 + $0x20] sm:$0xf] }
  0x14   :  { %201 = vmatpush.bf16.msra.mxu1 %v535_v13  ;;  %v515_v32 = vor.u32 %v651_v29, %v512_v30  ;;  %v650_v34 = vld [vmem:[#allocation2 + $0x24] sm:$0xf0]  ;;  %v649_v35 = vld [vmem:[#allocation2 + $0x24] sm:$0xf]  ;;  %v504_v36 = vld [vmem:[#allocation2 + $0x28] sm:$0xf0] }
  0x15   :  { %214 = vmatpush.bf16.msra.mxu2 %v539_v14  ;;  %v503_v37 = vor.u32 %v650_v34, %v502_v33  ;;  %v507_v38 = vor.u32 %v649_v35, %v504_v36  ;;  %v494_v39 = vld [vmem:[#allocation2 + $0x10] sm:$0xf]  ;;  %v648_v40 = vld [vmem:[#allocation2 + $0x14] sm:$0xf0]  ;;  %v647_v41 = vld [vmem:[#allocation2 + $0x14] sm:$0xf] }
  0x16   :  { %v495_v42 = vor.u32 %v648_v40, %v494_v39  ;;  %v496_v43 = vld [vmem:[#allocation2 + $0x18] sm:$0xf0]  ;;  %v486_v45 = vld [vmem:[#allocation2] sm:$0xf]  ;;  %v646_v46 = vld [vmem:[#allocation2 + $0x4] sm:$0xf0] }
  0x17   :  { %v499_v44 = vor.u32 %v647_v41, %v496_v43  ;;  %v645_v47 = vld [vmem:[#allocation2 + $0x4] sm:$0xf]  ;;  %v487_v48 = vor.u32 %v646_v46, %v486_v45  ;;  %v488_v49 = vld [vmem:[#allocation2 + $0x8] sm:$0xf0]  ;;  %v668_v51 = vld [vmem:[#allocation4 + $0x38] sm:$0xff] }
  0x18   :  { %202 = vmatpush.bf16.msra.mxu1 %v527_v20  ;;  %v491_v50 = vor.u32 %v645_v47, %v488_v49  ;;  %v676_v52 = vld [vmem:[#allocation4 + $0x78] sm:$0xff]  ;;  %362 = vmatpush.bf16.msra.mxu3 %v668_v51  ;;  %v667_v53 = vld [vmem:[#allocation4 + $0x30] sm:$0xff]  ;;  %v666_v55 = vld [vmem:[#allocation4 + $0x28] sm:$0xff] }
  0x19   :  { %215 = vmatpush.bf16.msra.mxu2 %v531_v21  ;;  %375 = vmatpush.bf16.msrb.mxu0 %v676_v52  ;;  %v675_v54 = vld [vmem:[#allocation4 + $0x70] sm:$0xff]  ;;  %v674_v56 = vld [vmem:[#allocation4 + $0x68] sm:$0xff]  ;;  %v665_v57 = vld [vmem:[#allocation4 + $0x20] sm:$0xff] }
  0x1a   :  { %v673_v58 = vld [vmem:[#allocation4 + $0x60] sm:$0xff]  ;;  %v664_v59 = vld [vmem:[#allocation4 + $0x18] sm:$0xff]  ;;  %v663_v61 = vld [vmem:[#allocation4 + $0x10] sm:$0xff] }
  0x1b   :  { %v672_v60 = vld [vmem:[#allocation4 + $0x58] sm:$0xff]  ;;  %v691_v62 = vld [vmem:[%s856_s2] ss:$0 sm:$0xff]  ;;  %v662_v4 = vld [vmem:[#allocation4 + $0x8] sm:$0xff] }
  0x1c   :  { %203 = vmatpush.bf16.msra.mxu1 %v519_v25  ;;  %363 = vmatpush.bf16.msra.mxu3 %v667_v53  ;;  %v671_v5 = vld [vmem:[#allocation4 + $0x50] sm:$0xff]  ;;  %v661_v6 = vld [vmem:[#allocation4] sm:$0xff]  ;;  %v670_v7 = vld [vmem:[#allocation4 + $0x48] sm:$0xff] }
  0x1d   :  { %216 = vmatpush.bf16.msra.mxu2 %v523_v26  ;;  %376 = vmatpush.bf16.msrb.mxu0 %v675_v54  ;;  %v669_v8 = vld [vmem:[#allocation4 + $0x40] sm:$0xff]  ;;  %v684_v9 = vld [vmem:[%s861_s7 + $0x38] sm:$0xff]  ;;  %v683_v10 = vld [vmem:[%s861_s7 + $0x30] sm:$0xff] }
  0x1e   :  { %v682_v11 = vld [vmem:[%s861_s7 + $0x28] sm:$0xff]  ;;  %v681_v12 = vld [vmem:[%s861_s7 + $0x20] sm:$0xff]  ;;  %v680_v14 = vld [vmem:[%s861_s7 + $0x18] sm:$0xff] }
  0x1f   :  { %v114_v13 = vld [vmem:[%s858_s4] sm:$0x3]  ;;  %v679_v17 = vld [vmem:[%s861_s7 + $0x10] sm:$0xff]  ;;  %v678_v28 = vld [vmem:[%s861_s7 + $0x8] sm:$0xff] }
  0x20   :  { %204 = vmatpush.bf16.msra.mxu1 %v511_v31  ;;  %364 = vmatpush.bf16.msra.mxu3 %v666_v55  ;;  %v116_v15 = vperm.slane %v114_v13, 0  ;;  %v117_v20 = vperm.slane %v114_v13, 1  ;;  %v677_v29 = vld [vmem:[%s861_s7] sm:$0xff] }
  0x21   :  { %217 = vmatpush.bf16.msra.mxu2 %v515_v32  ;;  %377 = vmatpush.bf16.msrb.mxu0 %v674_v56  ;;  %v692_v30 = vld [vmem:[%s860_s6] ss:$0 sm:$0xff] }
  0x22   :  { %v693_v39 = vld [vmem:[%s862_s8] ss:$0 sm:$0xff] }
  0x24   :  { %205 = vmatpush.bf16.msra.mxu1 %v503_v37  ;;  %365 = vmatpush.bf16.msra.mxu3 %v665_v57 }
  0x25   :  { %218 = vmatpush.bf16.msra.mxu2 %v507_v38  ;;  %378 = vmatpush.bf16.msrb.mxu0 %v673_v58 }
  0x28   :  { %206 = vmatpush.bf16.msra.mxu1 %v495_v42  ;;  %366 = vmatpush.bf16.msra.mxu3 %v664_v59 }
  0x29   :  { %219 = vmatpush.bf16.msra.mxu2 %v499_v44  ;;  %379 = vmatpush.bf16.msrb.mxu0 %v672_v60 }
  0x2c   :  { %207 = vmatpush.bf16.msra.mxu1 %v487_v48  ;;  %367 = vmatpush.bf16.msra.mxu3 %v663_v61 }
  0x2d   :  { %220 = vmatpush.bf16.msra.mxu2 %v491_v50  ;;  %380 = vmatpush.bf16.msrb.mxu0 %v671_v5 }
  0x30   :  { %368 = vmatpush.bf16.msra.mxu3 %v662_v4  ;;  %458 = vmatpush.bf16.msrb.mxu1 %v684_v9 }
  0x31   :  { %381 = vmatpush.bf16.msrb.mxu0 %v670_v7 }
  0x34   :  { %369 = vmatpush.bf16.msra.mxu3 %v661_v6  ;;  %459 = vmatpush.bf16.msrb.mxu1 %v683_v10 }
  0x35   :  { %382 = vmatpush.bf16.msrb.mxu0 %v669_v8 }
  0x38   :  { %460 = vmatpush.bf16.msrb.mxu1 %v682_v11 }
  0x3c   :  { %461 = vmatpush.bf16.msrb.mxu1 %v681_v12 }
  0x40   :  { %462 = vmatpush.bf16.msrb.mxu1 %v680_v14 }
  0x44   :  { %463 = vmatpush.bf16.msrb.mxu1 %v679_v17 }
  0x48   :  { %464 = vmatpush.bf16.msrb.mxu1 %v678_v28 }
  0x4c   :  { %465 = vmatpush.bf16.msrb.mxu1 %v677_v29 }
  0x8d   :  { %v92_v63 = vpop.f32.mrf.mxu0 }
  0x8e   :  { %v93_v0 = vadd.f32 %v691_v62, %v92_v63 }
  0x90   :  { %v96_v1 = vmax.f32 %v93_v0, 0.0 }
  0x92   :  { %v97_v2 = vpack.c.bf16 %v96_v1, %v96_v1 }
  0x94   :  { %208 = vmatmul.bf16.vlgmr.msra.gmra.mxu1 %v97_v2  ;;  %221 = vmatmul.bf16.vlgmr.msra.gmra.mxu2 %v97_v2 }
  0x95   :  { %v94_v3 = vpop.f32.mrf.mxu0 }
 0x111   :  { %v209_v16 = vpop.f32.mrf.mxu1 }
 0x112   :  { %v210_v18 = vadd.f32 %v209_v16, %v116_v15 }
 0x114   :  { %v226_v19 = vmax.f32 %v210_v18, 0.0 }
 0x116   :  { %v228_v21 = vpack.c.bf16 %v226_v19, %v226_v19 }
 0x117   :  { %v222_v22 = vpop.f32.mrf.mxu2 }
 0x118   :  { %v223_v23 = vadd.f32 %v222_v22, %v117_v20  ;;  %370 = vmatmul.bf16.vlgmr.msra.gmra.mxu3 %v228_v21 }
 0x119   :  { %v211_v24 = vpop.f32.mrf.mxu1 }
 0x11a   :  { %v227_v25 = vmax.f32 %v223_v23, 0.0 }
 0x11c   :  { %v229_v26 = vpack.c.bf16 %v227_v25, %v227_v25 }
 0x11e   :  { %383 = vmatmul.bf16.vlgmr.msrb.gmra.mxu0 %v229_v26 }
 0x11f   :  { %v224_v27 = vpop.f32.mrf.mxu2 }
 0x19b   :  { %v371_v31 = vpop.f32.mrf.mxu3  ;;  %v384_v32 = vpop.f32.mrf.mxu0 }
 0x19c   :  { %v372_v33 = vadd.f32 %v692_v30, %v371_v31 }
 0x19e   :  { %v385_v34 = vadd.f32 %v384_v32, %v372_v33 }
 0x1a0   :  { %v388_v35 = vmax.f32 %v385_v34, 0.0 }
 0x1a2   :  { %v389_v36 = vpack.c.bf16 %v388_v35, %v388_v35 }
 0x1a3   :  { %v373_v37 = vpop.f32.mrf.mxu3  ;;  %v386_v38 = vpop.f32.mrf.mxu0 }
 0x1a4   :  { %466 = vmatmul.bf16.vlgmr.msrb.gmra.mxu1 %v389_v36 }
 0x221   :  { %v467_v40 = vpop.f32.mrf.mxu1 }
 0x222   :  { %v468_v41 = vadd.f32 %v693_v39, %v467_v40 }
 0x224   :  { %472 = vst.msk [vmem:[%s863_s9] sm:$0xff] %vm471_vm1, %v468_v41 }
 0x229   :  { %v469_v42 = vpop.f32.mrf.mxu1 }
 0x22a   :  { %477 = vsyncpa [#allocation3], 1 }
 0x22b   :  { %478 = vsyncpa [#allocation5], 1 }

</bundles_post_ra>
